<compile_context>
chip_gen: v7x
topology: tpu7x:2x2x1
jax: 0.10.0
libtpu: 0.0.40
codegen_flags: <defaults>
</compile_context>

<pallas_src>
import numpy as np
import jax
import jax.numpy as jnp
from jax.experimental import pallas as pl
from jax.experimental.pallas import tpu as pltpu


def _final_activation_kernel(x_ref, cls_ref, o_ref):
    # (B, TILE_N) tile; compute in f32 regardless of I/O dtype.
    x = x_ref[...].astype(jnp.float32)
    cls = cls_ref[...]                      # (1, TILE_N) int32 class ids, broadcast over batch

    # Per-position activations (VPU / EUP).
    t = jnp.tanh(x)
    # sigmoid via tanh identity: avoids a full-width (B, N) divide.
    s = 0.5 * (jnp.tanh(0.5 * x) + 1.0)
    r = jnp.maximum(x, 0.0)

    # Softmax over the BATCH dimension (dim=0 in the PyTorch module), per column.
    # Exact because the full batch lives in this block; only the feature axis is tiled.
    mx = jnp.max(x, axis=0, keepdims=True)
    ex = jnp.exp(x - mx)
    inv = 1.0 / jnp.sum(ex, axis=0, keepdims=True)   # divide only on the (1, TILE_N) row
    sf = ex * inv

    out = jnp.where(cls == 0, t,
          jnp.where(cls == 1, s,
          jnp.where(cls == 2, r, sf)))
    o_ref[...] = out.astype(o_ref.dtype)


def final_activation(x, tanh_pos, sigmoid_pos, relu_pos, output_size):
    """Pallas implementation of FinalActivation.forward.

    x: (B, output_size) float32/bfloat16
    returns: (B, output_size) in x.dtype
    """
    B, N = x.shape
    assert N == output_size

    softmax_pos = np.delete(
        np.arange(output_size),
        list(tanh_pos) + list(sigmoid_pos) + list(relu_pos),
    )

    LANE = 128
    # Tile only the feature (lane) axis; lane-dense, 128-aligned blocks.
    tile_n = min(512, ((N + LANE - 1) // LANE) * LANE)
    # Keep double-buffered (x, cls, out) f32 blocks well under the v7x scoped-VMEM
    # budget (64 MiB physical / 32 MiB scoped): ~6 live (B, TILE_N) buffers.
    vmem_budget_bytes = 8 * 1024 * 1024
    max_tile = max(LANE, (vmem_budget_bytes // (6 * max(B, 1) * 4)) // LANE * LANE)
    tile_n = min(tile_n, max_tile)
    n_pad = ((N + tile_n - 1) // tile_n) * tile_n

    # Single packed class-id row: 0=tanh, 1=sigmoid, 2=relu, 3=softmax.
    cls_np = np.full((1, n_pad), 2, dtype=np.int32)  # padded cols -> relu (sliced off below)
    if len(tanh_pos):
        cls_np[0, np.asarray(list(tanh_pos), dtype=np.int64)] = 0
    if len(sigmoid_pos):
        cls_np[0, np.asarray(list(sigmoid_pos), dtype=np.int64)] = 1
    if len(relu_pos):
        cls_np[0, np.asarray(list(relu_pos), dtype=np.int64)] = 2
    if len(softmax_pos):
        cls_np[0, np.asarray(softmax_pos, dtype=np.int64)] = 3
    cls = jnp.asarray(cls_np)

    x_pad = x if n_pad == N else jnp.pad(x, ((0, 0), (0, n_pad - N)))

    out_pad = pl.pallas_call(
        _final_activation_kernel,
        out_shape=jax.ShapeDtypeStruct((B, n_pad), x.dtype),
        grid=(n_pad // tile_n,),
        in_specs=[
            pl.BlockSpec((B, tile_n), lambda j: (0, j)),
            pl.BlockSpec((1, tile_n), lambda j: (0, j)),
        ],
        out_specs=pl.BlockSpec((B, tile_n), lambda j: (0, j)),
        compiler_params=pltpu.CompilerParams(
            dimension_semantics=("parallel",),   # shard feature tiles across v7x's 2 TCs
        ),
    )(x_pad, cls)

    return out_pad[:, :N] if n_pad != N else out_pad


def _reference(x, tanh_pos, sigmoid_pos, relu_pos, output_size):
    x = np.asarray(x, dtype=np.float32)
    out = np.zeros((x.shape[0], output_size), dtype=np.float32)
    softmax_pos = list(
        np.delete(np.arange(output_size), list(tanh_pos) + list(sigmoid_pos) + list(relu_pos))
    )
    out[:, tanh_pos] = np.tanh(x[:, tanh_pos])
    out[:, sigmoid_pos] = 1.0 / (1.0 + np.exp(-x[:, sigmoid_pos]))
    out[:, relu_pos] = np.maximum(x[:, relu_pos], 0.0)
    sel = x[:, softmax_pos]
    e = np.exp(sel - sel.max(axis=0, keepdims=True))
    out[:, softmax_pos] = e / e.sum(axis=0, keepdims=True)
    return out


if __name__ == "__main__":
    output_size = 16
    tanh_pos = [0, 1, 2, 3]
    sigmoid_pos = [4, 5, 6, 7]
    relu_pos = [8, 9, 10]
    # softmax positions are the remainder: [11, 12, 13, 14, 15]

    B = 8
    key = jax.random.PRNGKey(0)
    x = jax.random.normal(key, (B, output_size), dtype=jnp.float32)

    out = final_activation(x, tanh_pos, sigmoid_pos, relu_pos, output_size)
    out = jax.block_until_ready(out)

    ref = _reference(np.asarray(x), tanh_pos, sigmoid_pos, relu_pos, output_size)
    np.testing.assert_allclose(np.asarray(out), ref, rtol=1e-5, atol=1e-5)

    print("KERNEL_OK")
</pallas_src>

<mosaic_0001>
module attributes {stable_mosaic.version = 11 : i64} {
  func.func @_final_activation_kernel(%arg0: i32, %arg1: memref<8x128xf32, #tpu.memory_space<vmem>>, %arg2: memref<1x128xi32, #tpu.memory_space<vmem>>, %arg3: memref<8x128xf32, #tpu.memory_space<vmem>>) attributes {dimension_semantics = [#tpu.dimension_semantics<parallel>], iteration_bounds = array<i64: 1>, scalar_prefetch = 0 : i64, scratch_operands = 0 : i64, tpu.core_type = #tpu.core_type<tc>, window_params = [{transform_indices = @transform_0, window_bounds = array<i64: 8, 128>}, {transform_indices = @transform_1, window_bounds = array<i64: 1, 128>}, {transform_indices = @transform_2, window_bounds = array<i64: 8, 128>}]} {
    %c0 = arith.constant 0 : index
    %c0_0 = arith.constant 0 : index
    %0 = vector.load %arg1[%c0, %c0_0] : memref<8x128xf32, #tpu.memory_space<vmem>>, vector<8x128xf32>
    %c0_1 = arith.constant 0 : index
    %c0_2 = arith.constant 0 : index
    %1 = vector.load %arg2[%c0_1, %c0_2] : memref<1x128xi32, #tpu.memory_space<vmem>>, vector<1x128xi32>
    %2 = math.tanh %0 : vector<8x128xf32>
    %cst = arith.constant 5.000000e-01 : f32
    %3 = vector.broadcast %cst : f32 to vector<8x128xf32>
    %4 = arith.mulf %3, %0 : vector<8x128xf32>
    %5 = math.tanh %4 : vector<8x128xf32>
    %cst_3 = arith.constant 1.000000e+00 : f32
    %6 = vector.broadcast %cst_3 : f32 to vector<8x128xf32>
    %7 = arith.addf %5, %6 : vector<8x128xf32>
    %cst_4 = arith.constant 5.000000e-01 : f32
    %8 = vector.broadcast %cst_4 : f32 to vector<8x128xf32>
    %9 = arith.mulf %8, %7 : vector<8x128xf32>
    %cst_5 = arith.constant 0.000000e+00 : f32
    %10 = vector.broadcast %cst_5 : f32 to vector<8x128xf32>
    %11 = arith.maximumf %0, %10 : vector<8x128xf32>
    %cst_6 = arith.constant dense<0xFF800000> : vector<128xf32>
    %12 = vector.multi_reduction <maximumf>, %0, %cst_6 [0] : vector<8x128xf32> to vector<128xf32>
    %13 = vector.shape_cast %12 : vector<128xf32> to vector<1x128xf32>
    %14 = vector.broadcast %13 : vector<1x128xf32> to vector<8x128xf32>
    %15 = arith.subf %0, %14 : vector<8x128xf32>
    %16 = math.exp %15 : vector<8x128xf32>
    %cst_7 = arith.constant dense<0.000000e+00> : vector<128xf32>
    %17 = vector.multi_reduction <add>, %16, %cst_7 [0] : vector<8x128xf32> to vector<128xf32>
    %18 = vector.shape_cast %17 : vector<128xf32> to vector<1x128xf32>
    %cst_8 = arith.constant 1.000000e+00 : f32
    %19 = vector.broadcast %cst_8 : f32 to vector<1x128xf32>
    %20 = arith.divf %19, %18 : vector<1x128xf32>
    %21 = vector.broadcast %20 : vector<1x128xf32> to vector<8x128xf32>
    %22 = arith.mulf %16, %21 : vector<8x128xf32>
    %c0_i32 = arith.constant 0 : i32
    %23 = vector.broadcast %c0_i32 : i32 to vector<1x128xi32>
    %24 = arith.cmpi eq, %1, %23 : vector<1x128xi32>
    %c1_i32 = arith.constant 1 : i32
    %25 = vector.broadcast %c1_i32 : i32 to vector<1x128xi32>
    %26 = arith.cmpi eq, %1, %25 : vector<1x128xi32>
    %c2_i32 = arith.constant 2 : i32
    %27 = vector.broadcast %c2_i32 : i32 to vector<1x128xi32>
    %28 = arith.cmpi eq, %1, %27 : vector<1x128xi32>
    %29 = vector.shape_cast %28 : vector<1x128xi1> to vector<1x128xi1>
    %30 = vector.broadcast %29 : vector<1x128xi1> to vector<8x128xi1>
    %31 = arith.select %30, %11, %22 : vector<8x128xi1>, vector<8x128xf32>
    %32 = vector.shape_cast %26 : vector<1x128xi1> to vector<1x128xi1>
    %33 = vector.broadcast %32 : vector<1x128xi1> to vector<8x128xi1>
    %34 = arith.select %33, %9, %31 : vector<8x128xi1>, vector<8x128xf32>
    %35 = vector.shape_cast %24 : vector<1x128xi1> to vector<1x128xi1>
    %36 = vector.broadcast %35 : vector<1x128xi1> to vector<8x128xi1>
    %37 = arith.select %36, %2, %34 : vector<8x128xi1>, vector<8x128xf32>
    %c0_9 = arith.constant 0 : index
    %c0_10 = arith.constant 0 : index
    %38 = vector.load %arg3[%c0_9, %c0_10] : memref<8x128xf32, #tpu.memory_space<vmem>>, vector<8x128xf32>
    tpu.vector_store %arg3[%c0_9, %c0_10], %37 {strides = array<i32>} : memref<8x128xf32, #tpu.memory_space<vmem>>, vector<8x128xf32>,
    return
  }
  func.func @transform_0(%arg0: i32) -> (i32, i32) {
    %c0_i32 = arith.constant 0 : i32
    %c0_i32_0 = arith.constant 0 : i32
    return %c0_i32, %arg0 : i32, i32
  }
  func.func @transform_1(%arg0: i32) -> (i32, i32) {
    %c0_i32 = arith.constant 0 : i32
    %c0_i32_0 = arith.constant 0 : i32
    return %c0_i32, %arg0 : i32, i32
  }
  func.func @transform_2(%arg0: i32) -> (i32, i32) {
    %c0_i32 = arith.constant 0 : i32
    %c0_i32_0 = arith.constant 0 : i32
    return %c0_i32, %arg0 : i32, i32
  }
}

</mosaic_0001>

<bundles_post_ra>
// kernel: tpu_custom_call.1
= control target key start
LH: loop header
LB: loop body
LE: loop exit
PB: predicated region body
PF: predicated region fallthrough
CT: control target
= control target key end

     0   :  { %7 = vsyncpa [#allocation3], 0  ;;  %s194_s0 = inlined_call_operand.hbm [shape: f32[8,128], index: 0, kind: input, shape index: {}]   ;;  %s195_s1 = inlined_call_operand.vmem [shape: s32[1,128], index: 1, kind: input, shape index: {}]   ;;  %s196_s2 = inlined_call_operand.hbm [shape: f32[8,128], index: 2, kind: output, shape index: {}]  }
   0x1   :  { %8 = vsyncpa [#allocation4], 0  ;;  %s149_s9 = smov [#allocation2]   ;;  %s101_s13 = scalar_lea.hbm %s194_s0, 128 }
   0x2   :  { %s15_s10 = sshll.u32 %s149_s9, 4  ;;  %p102_p0 = scmp.ne.s32.totalorder %s194_s0, %s101_s13  ;;  %s16_s10 = int_to_ptr.vmem [resolvable:$true] %s15_s10 }
   0x3   :  { %p105_p1 = scmp.lt.u32.totalorder %s101_s13, %s194_s0 }
   0x5   :  { %p107_p2 = pnand %p105_p1, %p102_p0 }
   0x7   :  { %110 = shalt.err (!%p107_p2)
}
   0x8   :  { %s111_s18 = scalar_lea.vmem %s16_s10, 128  ;;  %p116_p4 = scmp.lt.s32.totalorder %s16_s10, %s16_s10 }
   0x9   :  { %p112_p3 = scmp.ne.s32.totalorder %s16_s10, %s111_s18  ;;  %p117_p5 = scmp.lt.s32.totalorder %s111_s18, %s111_s18 }
   0xb   :  { %p118_p6 = por %p117_p5, %p116_p4 }
   0xd   :  { %p119_p7 = pnand %p118_p6, %p112_p3 }
   0xf   :  { %122 = shalt.err (!%p119_p7)
}
  0x10   :  { %18 = dma.hbm_to_vmem [thread:$0]  %s194_s0, 128, %s16_s10, [#allocation3]  }
  0x11   :  { %145 = dma.done.wait [#allocation3], 128  }
  0x12   :  { %146 = vsyncadd [#allocation3], 4294967168  ;;  %v24_v0 = vld [vmem:[#allocation2] sm:$0xff]  ;;  %v54_v15 = vlaneseq  ;;  %v150_v22 = vmov 0  }
  0x13   :  { %v32_v1 = vrot.slane %v24_v0, 4  ;;  %v27_v11 = vmul.f32 0.5, %v24_v0  ;;  %v25_v17 = vld [vmem:[%s195_s1] sm:$0x1]  ;;  %v31_v30 = vmax.f32 %v24_v0, 0.0  ;;  %s151_s1 = smov [#allocation5]  }
  0x14   :  { %v55_v19 = vshrl.u32 %v54_v15, 7  ;;  %vm52_vm0 = vcmp.eq.s32.totalorder %v25_v17, 2  ;;  %vm51_vm1 = vcmp.eq.s32.totalorder %v25_v17, 1  ;;  %vm50_vm2 = vcmp.eq.s32.totalorder %v25_v17, 0  ;;  %s81_s22 = sshll.u32 %s151_s1, 4  ;;  %s82_s22 = int_to_ptr.vmem [resolvable:$true] %s81_s22 }
  0x15   :  { %v33_v2 = vmax.f32 %v24_v0, %v32_v1  ;;  %v53_v23 = vsel %vm52_vm0, 1, %v150_v22  ;;  %v60_v24 = vsel %vm51_vm1, 1, %v150_v22  ;;  %v67_v25 = vsel %vm50_vm2, 1, %v150_v22  ;;  %s123_s23 = scalar_lea.vmem %s82_s22, 128  ;;  %p128_p9 = scmp.lt.s32.totalorder %s82_s22, %s82_s22 }
  0x16   :  { %v56_v20 = vsub.s32 0, %v55_v19  ;;  %p124_p8 = scmp.ne.s32.totalorder %s82_s22, %s123_s23  ;;  %p129_p10 = scmp.lt.s32.totalorder %s123_s23, %s123_s23 }
  0x17   :  { %v34_v3 = vrot.slane %v33_v2, 2 }
  0x18   :  { %v57_v27 = vrot.slane %v53_v23, %v56_v20  ;;  %v64_v28 = vrot.slane %v60_v24, %v56_v20  ;;  %v71_v29 = vrot.slane %v67_v25, %v56_v20  ;;  %p130_p11 = por %p129_p10, %p128_p9 }
  0x19   :  { %v35_v4 = vmax.f32 %v33_v2, %v34_v3 }
  0x1a   :  { %vm58_vm3 = vcmp.eq.s32.totalorder %v57_v27, 1  ;;  %vm65_vm4 = vcmp.eq.s32.totalorder %v64_v28, 1  ;;  %vm72_vm5 = vcmp.eq.s32.totalorder %v71_v29, 1  ;;  %p131_p12 = pnand %p130_p11, %p124_p8 }
  0x1b   :  { %v36_v5 = vrot.slane %v35_v4, 1 }
  0x1d   :  { %v37_v6 = vmax.f32 %v35_v4, %v36_v5 }
  0x1f   :  { %v38_v7 = vsub.f32 %v24_v0, %v37_v6 }
  0x21   :  { %v39_v8 = vmul.f32 1.442695, %v38_v7 }
  0x23   :  { %93 = vpow2.f32 %v39_v8 }
  0x24   :  { %95 = vtanh.f32 %v27_v11 }
  0x2d   :  { %v94_v9 = vpop.eup %93 }
  0x2e   :  { %v41_v10 = vrot.slane %v94_v9, 4  ;;  %v96_v21 = vpop.eup %95 }
  0x2f   :  { %v29_v26 = vadd.f32 1.0, %v96_v21 }
  0x30   :  { %v42_v12 = vadd.f32 %v94_v9, %v41_v10 }
  0x31   :  { %v30_v32 = vmul.f32 0.5, %v29_v26 }
  0x32   :  { %v43_v13 = vrot.slane %v42_v12, 2 }
  0x34   :  { %v44_v14 = vadd.f32 %v43_v13, %v42_v12 }
  0x36   :  { %v45_v16 = vrot.slane %v44_v14, 1 }
  0x38   :  { %v46_v18 = vadd.f32 %v45_v16, %v44_v14 }
  0x3a   :  { %97 = vrcp.f32 %v46_v18 }
  0x3b   :  { %99 = vtanh.f32 %v24_v0 }
  0x44   :  { %v98_v31 = vpop.eup %97 }
  0x45   :  { %v49_v33 = vmul.f32 %v98_v31, %v94_v9  ;;  %v100_v34 = vpop.eup %99 }
  0x47   :  { %v59_v35 = vsel %vm58_vm3, %v31_v30, %v49_v33 }
  0x48   :  { %v66_v36 = vsel %vm65_vm4, %v30_v32, %v59_v35 }
  0x49   :  { %v73_v37 = vsel %vm72_vm5, %v100_v34, %v66_v36 }
  0x4a   :  { %74 = vst [vmem:[#allocation5] sm:$0xff] %v73_v37 }
  0x4b   :  { %134 = shalt.err (!%p131_p12)
}
  0x4c   :  { %s135_s26 = scalar_lea.hbm %s196_s2, 128 }
  0x4d   :  { %p136_p13 = scmp.ne.s32.totalorder %s196_s2, %s135_s26  ;;  %p139_p0 = scmp.lt.u32.totalorder %s135_s26, %s196_s2 }
  0x4f   :  { %p141_p1 = pnand %p139_p0, %p136_p13 }
  0x51   :  { %144 = shalt.err (!%p141_p1)
}
  0x52   :  { %84 = dma.vmem_to_hbm [thread:$0]  %s82_s22, 128, %s196_s2, [#allocation4]  }
  0x53   :  { %147 = dma.done.wait [#allocation4], 128  }
  0x54   :  { %148 = vsyncadd [#allocation4], 4294967168 }
  0x55   :  { %88 = vsyncpa [#allocation3], 1 }
  0x56   :  { %89 = vsyncpa [#allocation4], 1 }

</bundles_post_ra>
